<compile_context>
chip_gen: v7x
topology: tpu7x:2x2x1
jax: 0.10.0
libtpu: 0.0.40
codegen_flags: <defaults>
</compile_context>

<pallas_src>
import functools

import jax
import jax.numpy as jnp
from jax import lax
from jax.experimental import pallas as pl
from jax.experimental.pallas import tpu as pltpu


def _is_nonneg_int_like(v):
    try:
        return float(v).is_integer() and float(v) >= 0
    except (TypeError, ValueError):
        return False


def _int_pow(base, exponent):
    """base**e for a non-negative Python int e, unrolled as VPU multiplies."""
    e = int(exponent)
    if e == 0:
        return jnp.ones_like(base)
    result = None
    cur = base
    while e > 0:
        if e & 1:
            result = cur if result is None else result * cur
        e >>= 1
        if e:
            cur = cur * cur
    return result


def _asl_kernel(x_ref, y_ref, out_ref, *, n_rows, tile_rows, gamma_neg,
                gamma_pos, clip, eps, binary_targets, needs_mask):
    x = x_ref[...].astype(jnp.float32)
    yv = y_ref[...]

    xs_pos = x
    xs_neg = 1.0 - x
    if clip is not None and clip > 0:
        xs_neg = jnp.minimum(xs_neg + clip, 1.0)  # (xs_neg + clip).clamp(max=1)

    use_focal = (gamma_neg > 0) or (gamma_pos > 0)

    if binary_targets:
        # y in {0, 1}: fold the two log terms into a single log (1 EUP op/elem)
        if jnp.issubdtype(yv.dtype, jnp.floating):
            is_pos = yv.astype(jnp.float32) > 0.5
        else:
            is_pos = yv.astype(jnp.int32) > 0
        pt = jnp.where(is_pos, xs_pos, xs_neg)
        loss = jnp.log(jnp.maximum(pt, eps))
        if use_focal:
            one_m_pt = 1.0 - pt
            if _is_nonneg_int_like(gamma_pos) and _is_nonneg_int_like(gamma_neg):
                # integer powers as unrolled VPU multiplies (no extra exp/log)
                w = jnp.where(is_pos,
                              _int_pow(one_m_pt, gamma_pos),
                              _int_pow(one_m_pt, gamma_neg))
            else:
                gamma = jnp.where(is_pos, jnp.float32(gamma_pos),
                                  jnp.float32(gamma_neg))
                w = jnp.power(one_m_pt, gamma)
            loss = loss * w
    else:
        # general (soft-label) path: mirrors the reference expression exactly
        y = yv.astype(jnp.float32)
        los_pos = y * jnp.log(jnp.maximum(xs_pos, eps))
        los_neg = (1.0 - y) * jnp.log(jnp.maximum(xs_neg, eps))
        loss = los_pos + los_neg
        if use_focal:
            pt = xs_pos * y + xs_neg * (1.0 - y)
            one_sided_gamma = gamma_pos * y + gamma_neg * (1.0 - y)
            loss = loss * jnp.power(1.0 - pt, one_sided_gamma)

    if needs_mask:
        # Rows past the true N in the (ragged) last block hold undefined data
        # from the clipped DMA; select them to exactly zero (kills any NaN).
        rows = (pl.program_id(0) * tile_rows
                + lax.broadcasted_iota(jnp.int32, loss.shape, 0))
        loss = jnp.where(rows < n_rows, loss, 0.0)

    if tile_rows % 8 == 0:
        # Fold the (tile_rows, C) tile to a lane-dense (8, C) partial with a
        # log-depth tree of VPU adds over static sublane-aligned slices.
        slabs = [loss[s * 8:(s + 1) * 8, :] for s in range(tile_rows // 8)]
        while len(slabs) > 1:
            nxt = [a + b for a, b in zip(slabs[0::2], slabs[1::2])]
            if len(slabs) % 2:
                nxt.append(slabs[-1])
            slabs = nxt
        out_ref[...] = slabs[0]
    else:
        # tiny-N fallback (tile_rows == N < 8): single sublane reduce
        out_ref[...] = jnp.sum(loss, axis=0, keepdims=True)


def _pick_tile_rows(n, c, x_itemsize, y_itemsize, requested, vmem_budget_bytes):
    # sublane packing: f32 -> 8, bf16 -> 16, int8/bool -> 32 rows per vreg tile
    mult = max(8, 32 // x_itemsize, 32 // y_itemsize)
    if requested is None:
        # 2 pipeline buffers per input + ~6 live f32 temporaries per row.
        per_row = c * (2 * (x_itemsize + y_itemsize) + 6 * 4)
        requested = max(mult, vmem_budget_bytes // max(per_row, 1))
        requested = min(requested, 1024)  # past the ~512-1024 row HBM plateau
    requested = int(requested)
    # prefer multiples of `mult`, fall back to multiples of 8, never exceed
    # the array's row extent (block <= array, last block ragged + masked).
    for m in (mult, 8):
        t = min((requested // m) * m, (n // m) * m)
        if t >= m:
            return t
    return n  # n < 8: single full-extent block


def asymmetric_loss(x, y, *, gamma_neg=4, gamma_pos=1, clip=0.05, eps=1e-8,
                    binary_targets=None, tile_rows=None,
                    vmem_budget_bytes=12 << 20):
    """Pallas equivalent of AsymmetricLoss.forward(x, y). Returns an f32 scalar.

    Contract (matches the PyTorch module as written):
      * No sigmoid is applied — x must already be probabilities in (0, 1).
      * y is a multi-label binarized target; pass it as int8/bool (and x as
        bf16 if acceptable) to cut HBM traffic — casts happen in-kernel.
      * binary_targets=None infers the path from y.dtype: integer/bool targets
        use the fast path (threshold at 0), float targets use the exact
        soft-label reference formula (no silent 0.5-thresholding).
    """
    assert x.ndim == 2 and x.shape == y.shape
    n, c = x.shape

    if binary_targets is None:
        binary_targets = not jnp.issubdtype(y.dtype, jnp.floating)

    tile_rows = _pick_tile_rows(n, c, x.dtype.itemsize, y.dtype.itemsize,
                                tile_rows, vmem_budget_bytes)
    num_tiles = pl.cdiv(n, tile_rows)
    needs_mask = (n % tile_rows) != 0
    out_rows = 8 if tile_rows % 8 == 0 else 1

    kernel = functools.partial(
        _asl_kernel, n_rows=n, tile_rows=tile_rows, gamma_neg=gamma_neg,
        gamma_pos=gamma_pos, clip=clip, eps=eps,
        binary_targets=binary_targets, needs_mask=needs_mask)

    elems = n * c
    cost = pl.CostEstimate(
        flops=12 * elems,
        transcendentals=(1 if binary_targets else 4) * elems,
        bytes_accessed=elems * (x.dtype.itemsize + y.dtype.itemsize)
        + num_tiles * out_rows * c * 4,
    )

    # double-buffered inputs + double-buffered output + f32 temp headroom
    vmem_est = (2 * tile_rows * c * (x.dtype.itemsize + y.dtype.itemsize)
                + 2 * out_rows * c * 4
                + 8 * tile_rows * c * 4)
    vmem_limit = int(min(56 << 20, max(16 << 20, vmem_est)))  # < 64 MiB (v7x)

    partials = pl.pallas_call(
        kernel,
        out_shape=jax.ShapeDtypeStruct((num_tiles * out_rows, c), jnp.float32),
        grid_spec=pltpu.PrefetchScalarGridSpec(
            num_scalar_prefetch=0,
            grid=(num_tiles,),
            in_specs=[
                pl.BlockSpec((tile_rows, c), lambda i: (i, 0)),
                pl.BlockSpec((tile_rows, c), lambda i: (i, 0)),
            ],
            out_specs=pl.BlockSpec((out_rows, c), lambda i: (i, 0)),
        ),
        compiler_params=pltpu.CompilerParams(
            dimension_semantics=("parallel",),  # independent tiles -> megacore
            vmem_limit_bytes=vmem_limit,
        ),
        cost_estimate=cost,
    )(x, y)

    # tiny final reduction + negation in plain JAX (num_tiles*8*C f32 elems)
    return -jnp.sum(partials)


def asymmetric_loss_ref(x, y, *, gamma_neg=4, gamma_pos=1, clip=0.05, eps=1e-8):
    """Pure-JAX reference (mirrors the PyTorch forward exactly)."""
    x = x.astype(jnp.float32)
    y = y.astype(jnp.float32)
    xs_pos = x
    xs_neg = 1.0 - x
    if clip is not None and clip > 0:
        xs_neg = jnp.minimum(xs_neg + clip, 1.0)
    los_pos = y * jnp.log(jnp.maximum(xs_pos, eps))
    los_neg = (1.0 - y) * jnp.log(jnp.maximum(xs_neg, eps))
    loss = los_pos + los_neg
    pt = xs_pos * y + xs_neg * (1.0 - y)
    gamma = gamma_pos * y + gamma_neg * (1.0 - y)
    loss = loss * jnp.power(1.0 - pt, gamma)
    return -jnp.sum(loss)


if __name__ == "__main__":
    key = jax.random.PRNGKey(0)
    kx, ky = jax.random.split(key)

    N, C = 48, 128  # batch x num_classes
    # "probabilities" in (0, 1) (module skips sigmoid, so feed probs)
    x = jax.random.uniform(kx, (N, C), jnp.float32, minval=0.01, maxval=0.99)
    # multi-label binarized targets
    y_f32 = (jax.random.uniform(ky, (N, C), jnp.float32) > 0.7).astype(jnp.float32)
    y_i8 = y_f32.astype(jnp.int8)

    ref = asymmetric_loss_ref(x, y_f32)
    tol = dict(rtol=1e-4, atol=1e-2)

    # int8 targets -> binary fast path; tile=32, grid=2, masked ragged block.
    out_i8 = jax.block_until_ready(asymmetric_loss(x, y_i8))
    assert jnp.allclose(out_i8, ref, **tol), (out_i8, ref)

    # float targets -> exact general (soft-label) path by default.
    out_gen = jax.block_until_ready(asymmetric_loss(x, y_f32))
    assert jnp.allclose(out_gen, ref, **tol), (out_gen, ref)

    # float {0,1} targets with the explicit binary fast path.
    out_binf = jax.block_until_ready(asymmetric_loss(x, y_f32, binary_targets=True))
    assert jnp.allclose(out_binf, ref, **tol), (out_binf, ref)

    # ragged N (13 rows): tile=8, grid=2, in-kernel row masking.
    out_r = jax.block_until_ready(
        asymmetric_loss(x[:13], y_f32[:13], binary_targets=True))
    ref_r = asymmetric_loss_ref(x[:13], y_f32[:13])
    assert jnp.allclose(out_r, ref_r, **tol), (out_r, ref_r)

    # bf16 x + int8 y: 3 B/elem of HBM traffic instead of 8 B/elem.
    x_bf16 = x.astype(jnp.bfloat16)
    out_bf = jax.block_until_ready(asymmetric_loss(x_bf16, y_i8))
    ref_bf = asymmetric_loss_ref(x_bf16.astype(jnp.float32), y_f32)
    assert jnp.allclose(out_bf, ref_bf, **tol), (out_bf, ref_bf)

    print("KERNEL_OK")
</pallas_src>

<mosaic_0001>
module attributes {stable_mosaic.version = 11 : i64} {
  func.func @_asl_kernel(%arg0: i32, %arg1: memref<32x128xf32, #tpu.memory_space<vmem>>, %arg2: memref<32x128xi8, #tpu.memory_space<vmem>>, %arg3: memref<8x128xf32, #tpu.memory_space<vmem>>) attributes {dimension_semantics = [#tpu.dimension_semantics<parallel>], iteration_bounds = array<i64: 2>, scalar_prefetch = 0 : i64, scratch_operands = 0 : i64, tpu.core_type = #tpu.core_type<tc>, window_params = [{transform_indices = @transform_0, window_bounds = array<i64: 32, 128>}, {transform_indices = @transform_1, window_bounds = array<i64: 32, 128>}, {transform_indices = @transform_2, window_bounds = array<i64: 8, 128>}]} {
    %c0 = arith.constant 0 : index
    %c0_0 = arith.constant 0 : index
    %0 = vector.load %arg1[%c0, %c0_0] : memref<32x128xf32, #tpu.memory_space<vmem>>, vector<32x128xf32>
    %c0_1 = arith.constant 0 : index
    %c0_2 = arith.constant 0 : index
    %1 = vector.load %arg2[%c0_1, %c0_2] : memref<32x128xi8, #tpu.memory_space<vmem>>, vector<32x128xi8>
    %cst = arith.constant 1.000000e+00 : f32
    %2 = vector.broadcast %cst : f32 to vector<32x128xf32>
    %3 = arith.subf %2, %0 : vector<32x128xf32>
    %cst_3 = arith.constant 5.000000e-02 : f32
    %4 = vector.broadcast %cst_3 : f32 to vector<32x128xf32>
    %5 = arith.addf %3, %4 : vector<32x128xf32>
    %cst_4 = arith.constant 1.000000e+00 : f32
    %6 = vector.broadcast %cst_4 : f32 to vector<32x128xf32>
    %7 = arith.minimumf %5, %6 : vector<32x128xf32>
    %8 = arith.extsi %1 : vector<32x128xi8> to vector<32x128xi32>
    %c0_i32 = arith.constant 0 : i32
    %9 = vector.broadcast %c0_i32 : i32 to vector<32x128xi32>
    %10 = arith.cmpi sgt, %8, %9 : vector<32x128xi32>
    %11 = arith.select %10, %0, %7 : vector<32x128xi1>, vector<32x128xf32>
    %cst_5 = arith.constant 9.99999993E-9 : f32
    %12 = vector.broadcast %cst_5 : f32 to vector<32x128xf32>
    %13 = arith.maximumf %11, %12 : vector<32x128xf32>
    %14 = math.log %13 : vector<32x128xf32>
    %cst_6 = arith.constant 1.000000e+00 : f32
    %15 = vector.broadcast %cst_6 : f32 to vector<32x128xf32>
    %16 = arith.subf %15, %11 : vector<32x128xf32>
    %17 = arith.mulf %16, %16 : vector<32x128xf32>
    %18 = arith.mulf %17, %17 : vector<32x128xf32>
    %19 = arith.select %10, %16, %18 : vector<32x128xi1>, vector<32x128xf32>
    %20 = arith.mulf %14, %19 : vector<32x128xf32>
    %c32_i32 = arith.constant 32 : i32
    %21 = arith.muli %arg0, %c32_i32 : i32
    %22 = tpu.iota {dimensions = array<i32: 0>} : vector<32x128xi32>
    %23 = vector.broadcast %21 : i32 to vector<32x128xi32>
    %24 = arith.addi %23, %22 : vector<32x128xi32>
    %c48_i32 = arith.constant 48 : i32
    %25 = vector.broadcast %c48_i32 : i32 to vector<32x128xi32>
    %26 = arith.cmpi slt, %24, %25 : vector<32x128xi32>
    %cst_7 = arith.constant 0.000000e+00 : f32
    %27 = vector.broadcast %cst_7 : f32 to vector<32x128xf32>
    %28 = arith.select %26, %20, %27 : vector<32x128xi1>, vector<32x128xf32>
    %29 = vector.extract_strided_slice %28 {offsets = [0, 0], sizes = [8, 128], strides = [1, 1]} : vector<32x128xf32> to vector<8x128xf32>
    %30 = vector.extract_strided_slice %28 {offsets = [8, 0], sizes = [8, 128], strides = [1, 1]} : vector<32x128xf32> to vector<8x128xf32>
    %31 = vector.extract_strided_slice %28 {offsets = [16, 0], sizes = [8, 128], strides = [1, 1]} : vector<32x128xf32> to vector<8x128xf32>
    %32 = vector.extract_strided_slice %28 {offsets = [24, 0], sizes = [8, 128], strides = [1, 1]} : vector<32x128xf32> to vector<8x128xf32>
    %33 = arith.addf %29, %30 : vector<8x128xf32>
    %34 = arith.addf %31, %32 : vector<8x128xf32>
    %35 = arith.addf %33, %34 : vector<8x128xf32>
    %c0_8 = arith.constant 0 : index
    %c0_9 = arith.constant 0 : index
    %36 = vector.load %arg3[%c0_8, %c0_9] : memref<8x128xf32, #tpu.memory_space<vmem>>, vector<8x128xf32>
    tpu.vector_store %arg3[%c0_8, %c0_9], %35 {strides = array<i32>} : memref<8x128xf32, #tpu.memory_space<vmem>>, vector<8x128xf32>,
    return
  }
  func.func @transform_0(%arg0: i32) -> (i32, i32) {
    %c0_i32 = arith.constant 0 : i32
    %c0_i32_0 = arith.constant 0 : i32
    return %arg0, %c0_i32 : i32, i32
  }
  func.func @transform_1(%arg0: i32) -> (i32, i32) {
    %c0_i32 = arith.constant 0 : i32
    %c0_i32_0 = arith.constant 0 : i32
    return %arg0, %c0_i32 : i32, i32
  }
  func.func @transform_2(%arg0: i32) -> (i32, i32) {
    %c0_i32 = arith.constant 0 : i32
    %c0_i32_0 = arith.constant 0 : i32
    return %arg0, %c0_i32 : i32, i32
  }
}

</mosaic_0001>

<bundles_post_ra>
// kernel: tpu_custom_call.1
= control target key start
LH: loop header
LB: loop body
LE: loop exit
PB: predicated region body
PF: predicated region fallthrough
CT: control target
= control target key end

     0   :  { %7 = vsyncpa [#allocation3], 0  ;;  %s907_s0 = inlined_call_operand.hbm [shape: f32[48,128], index: 0, kind: input, shape index: {}]   ;;  %s908_s1 = inlined_call_operand.hbm [shape: s8[48,128], index: 1, kind: input, shape index: {}]   ;;  %s909_s2 = inlined_call_operand.hbm [shape: f32[16,128], index: 2, kind: output, shape index: {}]  }
   0x1   :  { %9 = vsyncpa [#allocation3 + $0x1], 0 }
   0x2   :  { %10 = vsyncpa [#allocation6], 0 }
   0x3   :  { %12 = vsyncpa [#allocation6 + $0x1], 0 }
   0x4   :  { %13 = vsyncpa [#allocation4], 0 }
   0x5   :  { %15 = vsyncpa [#allocation4 + $0x1], 0  ;;  %s658_s9 = smov 0   ;;  %s660_s10 = smov 0  }
   0x6   :  { %s662_s11 = smov 0   ;;  %s664_s12 = smov 0  }
   0x7 LB: > { %s679_s13 = sadd.s32 4294967295, %s634_s12   ;;  %s418_s14 = sadd.s32 4294967294, %s634_s12   ;;  %s634_s12 = sphi %s664_s12, %s930_s12   ;;  %s630_s11 = sphi %s662_s11, %s929_s11   ;;  %s626_s10 = sphi %s660_s10, %s928_s10   ;;  %s622_s9 = sphi %s658_s9, %s927_s9  }
   0x8   : > { %s683_s15 = sadd.s32 1, %s634_s12   ;;  %s28_s16 = sadd.s32 1, %s630_s11 }
   0x9   : > { %s25_s17 = ssub.s32 %s634_s12, %s683_s15  ;;  %p35_p0 = scmp.ne.s32.totalorder %s630_s11, %s626_s10 }
   0xa   : > { %p26_p1 = scmp.eq.s32.totalorder %s25_s17, 0  ;;  %p36_p2 = scmp.eq.s32.totalorder %s634_s12, 0 }
   0xb   : > { %p41_p3 = scmp.ne.s32.totalorder %s626_s10, %s622_s9  ;;  %p42_p4 = scmp.eq.s32.totalorder %s679_s13, 0 }
   0xc   : > { %s695_s18 = scalar_select %p26_p1, %s630_s11, %s28_s16  }
   0xd   : > { %p697_p5 = por %p36_p2, %p35_p0  ;;  %p701_p6 = por %p42_p4, %p41_p3 }
   0xe   : > { %p91_p7 = scmp.eq.s32.totalorder %s679_s13, 1  ;;  %p97_p8 = scmp.eq.s32.totalorder %s418_s14, 1 }
   0xf   : > { %p910_p11 = scmp.ge.s32.totalorder %s634_s12, 2 }
  0x10   : > { %p706_p9 = por %p91_p7, %p35_p0  ;;  %p710_p10 = por %p97_p8, %p41_p3 }
  0x11   : > { %113 = sbr.rel (%p910_p11) target bundleno = 94 (0x5e), region = 16 }
  0x12   : > { %s914_s21 = scalar_select %p706_p9, 1, 0 }
  0x13   : > { %s915_s22 = scalar_select %p710_p10, 1, 0 }
  0x18   : > { %116 = sbr.rel (!%p697_p5) target bundleno = 59 (0x3b), region = 20  ;;  %s117_s23 = sand.u32 (%p697_p5), 1, %s630_s11  }
  0x19   : > { %s422_s24 = sshll.u32 (%p697_p5), %s634_s12, 2  ;;  %s421_s25 = sshll.u32 (%p697_p5), %s117_s23, 5 }
  0x1a   : > { %s123_s26 = ssub.s32 (%p697_p5), 6, %s422_s24  ;;  %s724_s29 = scalar_lea.sflag (%p697_p5), [#allocation3], %s117_s23 }
  0x1b   : > { %p124_p12 = scmp.lt.s32.totalorder (%p697_p5), %s123_s26, 4  ;;  %s121_s30 = scalar_lea.vmem (%p697_p5), [#allocation2], %s421_s25 }
  0x1f   : > { %s932_s26 = smov (!%p124_p12, %s123_s26), 4 }
  0x20   : > { %s721_s27 = sshll.u32 %s932_s26, 7 }
  0x21   : > { %s128_s28 = ssub.s32 512, %s721_s27 }
  0x22   : > { %129 = vsyncadd %s724_s29, %s128_s28  ;;  %p424_p13 = scmp.ne.s32.totalorder %s721_s27, 0  ;;  %s444_s3 = sshll.u32 %s634_s12, 9 }
  0x23   : > { %s732_s6 = scalar_lea.hbm %s907_s0, %s444_s3  ;;  %s134_s7 = sshll.u32 %s121_s30, 4  ;;  %s734_s7 = int_to_ptr.vmem [resolvable:$true] %s134_s7 }
  0x24   : > { %s508_s8 = scalar_lea.hbm %s732_s6, %s721_s27  ;;  %s512_s17 = scalar_lea.hbm %s907_s0, 768 }
  0x25   : > { %p509_p0 = scmp.ne.s32.totalorder %s732_s6, %s508_s8  ;;  %p513_p3 = scmp.lt.u32.totalorder %s732_s6, %s907_s0 }
  0x26   : > { %p514_p4 = scmp.lt.u32.totalorder %s512_s17, %s508_s8  ;;  %p516_p8 = scmp.lt.u32.totalorder %s508_s8, %s732_s6 }
  0x27   : > { %p510_p1 = pnand %p509_p0, %p424_p13 }
  0x28   : > { %p515_p7 = por %p514_p4, %p513_p3 }
  0x29   : > { %p511_p2 = pneg %p510_p1 }
  0x2a   : > { %p517_p12 = por %p516_p8, %p515_p7 }
  0x2c   : > { %p518_p11 = pnand %p517_p12, %p511_p2 }
  0x2e   : > { %521 = shalt.err (!%p518_p11)
}
  0x2f   : > { %s522_s25 = scalar_lea.vmem %s734_s7, %s721_s27  ;;  %s636_s26 = smov [#allocation2]  }
  0x30   : > { %p523_p0 = scmp.ne.s32.totalorder %s734_s7, %s522_s25  ;;  %s526_s28 = sshll.u32 %s636_s26, 4  ;;  %s527_s28 = int_to_ptr.vmem [resolvable:$false] %s526_s28 }
  0x31   : > { %s528_s30 = scalar_lea.vmem %s527_s28, 1024  ;;  %p529_p9 = scmp.lt.s32.totalorder %s734_s7, %s527_s28 }
  0x32   : > { %p524_p1 = pnand %p523_p0, %p424_p13  ;;  %p530_p3 = scmp.lt.s32.totalorder %s528_s30, %s522_s25 }
  0x34   : > { %p525_p10 = pneg %p524_p1  ;;  %p531_p4 = por %p530_p3, %p529_p9 }
  0x36   : > { %p532_p7 = pnand %p531_p4, %p525_p10 }
  0x38   : > { %535 = shalt.err (!%p532_p7)
}
  0x39   : > { %s637_s3 = smov 128   ;;  %s638_s4 = smov 8  }
  0x3a   : > { %140 = dma.hbm_to_vmem [thread:$0]  (%p424_p13), %s732_s6, %s721_s27, %s734_s7, %s724_s29, %s637_s3, %s637_s3, %s638_s4  }
  0x3b PF: > { %143 = sbr.rel (!%p697_p5) target bundleno = 94 (0x5e), region = 24  ;;  %s144_s5 = sand.u32 (%p697_p5), 1, %s630_s11  }
  0x3c   : > { %s429_s8 = sshll.u32 (%p697_p5), %s634_s12, 2  ;;  %s428_s14 = sshll.u32 (%p697_p5), %s144_s5, 3 }
  0x3d   : > { %s150_s16 = ssub.s32 (%p697_p5), 6, %s429_s8  ;;  %s768_s24 = scalar_lea.sflag (%p697_p5), [#allocation6], %s144_s5 }
  0x3e   : > { %p151_p9 = scmp.lt.s32.totalorder (%p697_p5), %s150_s16, 4  ;;  %s148_s27 = scalar_lea.vmem (%p697_p5), [#allocation5], %s428_s14 }
  0x42   : > { %s934_s16 = smov (!%p151_p9, %s150_s16), 4 }
  0x43   : > { %s765_s17 = sshll.u32 %s934_s16, 5 }
  0x44   : > { %s155_s23 = ssub.s32 128, %s765_s17 }
  0x45   : > { %156 = vsyncadd %s768_s24, %s155_s23  ;;  %p431_p5 = scmp.ne.s32.totalorder %s765_s17, 0  ;;  %s445_s19 = sshll.u32 %s634_s12, 7 }
  0x46   : > { %s776_s7 = scalar_lea.hbm %s908_s1, %s445_s19  ;;  %s161_s25 = sshll.u32 %s148_s27, 4  ;;  %s778_s25 = int_to_ptr.vmem [resolvable:$true] %s161_s25 }
  0x47   : > { %s536_s26 = scalar_lea.hbm %s776_s7, %s765_s17  ;;  %s540_s3 = scalar_lea.hbm %s908_s1, 192 }
  0x48   : > { %p537_p10 = scmp.ne.s32.totalorder %s776_s7, %s536_s26  ;;  %p541_p2 = scmp.lt.u32.totalorder %s776_s7, %s908_s1 }
  0x49   : > { %p542_p8 = scmp.lt.u32.totalorder %s540_s3, %s536_s26  ;;  %p544_p0 = scmp.lt.u32.totalorder %s536_s26, %s776_s7 }
  0x4a   : > { %p538_p11 = pnand %p537_p10, %p431_p5 }
  0x4b   : > { %p543_p12 = por %p542_p8, %p541_p2 }
  0x4c   : > { %p539_p13 = pneg %p538_p11 }
  0x4d   : > { %p545_p1 = por %p544_p0, %p543_p12 }
  0x4f   : > { %p546_p3 = pnand %p545_p1, %p539_p13 }
  0x51   : > { %549 = shalt.err (!%p546_p3)
}
  0x52   : > { %s550_s8 = scalar_lea.vmem %s778_s25, %s765_s17  ;;  %s639_s14 = smov [#allocation5]  }
  0x53   : > { %p551_p4 = scmp.ne.s32.totalorder %s778_s25, %s550_s8  ;;  %s554_s16 = sshll.u32 %s639_s14, 4  ;;  %s555_s16 = int_to_ptr.vmem [resolvable:$false] %s554_s16 }
  0x54   : > { %s556_s23 = scalar_lea.vmem %s555_s16, 256  ;;  %p557_p10 = scmp.lt.s32.totalorder %s778_s25, %s555_s16 }
  0x55   : > { %p552_p7 = pnand %p551_p4, %p431_p5  ;;  %p558_p11 = scmp.lt.s32.totalorder %s556_s23, %s550_s8 }
  0x57   : > { %p553_p9 = pneg %p552_p7  ;;  %p559_p2 = por %p558_p11, %p557_p10 }
  0x59   : > { %p560_p8 = pnand %p559_p2, %p553_p9 }
  0x5b   : > { %563 = shalt.err (!%p560_p8)
}
  0x5c   : > { %s640_s27 = smov 32   ;;  %s641_s19 = smov 2  }
  0x5d   : > { %167 = dma.hbm_to_vmem [thread:$0]  (%p431_p5), %s776_s7, %s765_s17, %s778_s25, %s768_s24, %s640_s27, %s640_s27, %s641_s19  }
  0x5e PF: > { %p435_p13 = scmp.ge.s32.totalorder %s634_s12, 1  ;;  %p169_p12 = scmp.lt.s32.totalorder %s634_s12, 3 }
  0x60   : > { %p170_p0 = pnand %p435_p13, %p169_p12 }
  0x61   : > { %s808_s29 = sand.u32 (!%p170_p0), 1, %s626_s10  }
  0x62   : > { %173 = sbr.rel (%p170_p0) target bundleno = 156 (0x9c), region = 28  ;;  %s436_s6 = sshll.u32 (!%p170_p0), %s808_s29, 5 }
  0x63   : > { %s176_s26 = scalar_lea.sflag (!%p170_p0), [#allocation3], %s808_s29  ;;  %s179_s28 = scalar_lea.vmem (!%p170_p0), [#allocation2], %s436_s6 }
  0x69   : > { %609 = dma.done.wait (%p701_p6), %s176_s26, 512  }
  0x6a   : > { %611 = vsyncadd (%p701_p6), %s176_s26, 4294966784  ;;  %s437_s17 = sshll.u32 %s808_s29, 3  ;;  %s185_s24 = scalar_lea.sflag [#allocation6], %s808_s29 }
  0x6b   : > { %s188_s7 = scalar_lea.vmem [#allocation5], %s437_s17 }
  0x6c   : > { %613 = dma.done.wait (%p701_p6), %s185_s24, 128  }
  0x6d   : > { %615 = vsyncadd (%p701_p6), %s185_s24, 4294967168  ;;  %v224_v0 = vld [vmem:[%s179_s28] sm:$0xff]  ;;  %v225_v1 = vld [vmem:[%s179_s28 + $0x8] sm:$0xff]  ;;  %v289_v27 = vlaneseq  ;;  %s439_s20 = sshll.u32 %s679_s13, 5  ;;  %s213_s25 = scalar_lea.vmem [#allocation7], %s437_s17 }
  0x6e   : > { %v226_v2 = vld [vmem:[%s179_s28 + $0x10] sm:$0xff]  ;;  %v227_v3 = vld [vmem:[%s179_s28 + $0x18] sm:$0xff]  ;;  %v447_v4 = vld [vmem:[%s188_s7] sm:$0xff]   ;;  %v232_v5 = vsub.f32 1.0, %v224_v0  ;;  %v233_v6 = vsub.f32 1.0, %v225_v1  ;;  %v294_v44 = vstv %s439_s20  ;;  %s325_s30 = sshll.u32 %s213_s25, 4  ;;  %s860_s30 = int_to_ptr.vmem [resolvable:$true] %s325_s30 }
  0x6f   : > { %v234_v7 = vsub.f32 1.0, %v226_v2  ;;  %v448_v8 = vunpack.c.0.s8 %v447_v4  ;;  %v449_v9 = vunpack.c.1.s8 %v447_v4  ;;  %v452_v10 = vunpack.c.2.s8 %v447_v4  ;;  %s441_s3 = sshll.u32 %s679_s13, 7  ;;  %s312_s14 = scalar_lea.sflag [#allocation4], %s808_s29 }
  0x70   : > { %v453_v11 = vunpack.c.3.s8 %v447_v4  ;;  %v235_v12 = vsub.f32 1.0, %v227_v3  ;;  %v236_v13 = vadd.f32 0.05, %v232_v5  ;;  %v237_v14 = vadd.f32 0.05, %v233_v6  ;;  %s865_s8 = scalar_lea.hbm %s909_s2, %s441_s3  ;;  %s564_s16 = scalar_lea.vmem %s860_s30, 128 }
  0x71   : > { %v238_v15 = vadd.f32 0.05, %v234_v7  ;;  %vm824_vm0 = vcmp.gt.s32.totalorder %v448_v8, 0  ;;  %vm828_vm1 = vcmp.gt.s32.totalorder %v449_v9, 0  ;;  %vm832_vm2 = vcmp.gt.s32.totalorder %v452_v10, 0  ;;  %p565_p6 = scmp.ne.s32.totalorder %s860_s30, %s564_s16  ;;  %p924_p5 = scmp.ne.s32.totalorder %s914_s21, 0 }
  0x72   : > { %v239_v18 = vadd.f32 0.05, %v235_v12  ;;  %v240_v19 = vmin.f32 %v236_v13, 1.0  ;;  %v241_v20 = vmin.f32 %v237_v14, 1.0  ;;  %vm836_vm3 = vcmp.gt.s32.totalorder %v453_v11, 0  ;;  %s642_s13 = smov [#allocation7]  }
  0x73   : > { %v242_v22 = vmin.f32 %v238_v15, 1.0  ;;  %v290_v38 = vshrl.u32 %v289_v27, 7  ;;  %p566_p1 = pnand %p565_p6, %p924_p5  ;;  %s568_s23 = sshll.u32 %s642_s13, 4  ;;  %s569_s23 = int_to_ptr.vmem [resolvable:$false] %s568_s23 }
  0x74   : > { %v243_v24 = vmin.f32 %v239_v18, 1.0  ;;  %v252_v25 = vsel %vm824_vm0, %v224_v0, %v240_v19  ;;  %v253_v26 = vsel %vm828_vm1, %v225_v1, %v241_v20  ;;  %s570_s27 = scalar_lea.vmem %s569_s23, 256  ;;  %p571_p4 = scmp.lt.s32.totalorder %s860_s30, %s569_s23 }
  0x75   : > { %v254_v28 = vsel %vm832_vm2, %v226_v2, %v242_v22  ;;  %v256_v29 = vmax.f32 %v252_v25, 1e-08  ;;  %v257_v30 = vmax.f32 %v253_v26, 1e-08  ;;  %v268_v31 = vsub.f32 1.0, %v252_v25  ;;  %p567_p3 = pneg %p566_p1  ;;  %p572_p7 = scmp.lt.s32.totalorder %s570_s27, %s564_s16 }
  0x76   : > { %v255_v32 = vsel %vm836_vm3, %v227_v3, %v243_v24  ;;  %v258_v33 = vmax.f32 %v254_v28, 1e-08  ;;  %v269_v34 = vsub.f32 1.0, %v253_v26  ;;  %v270_v36 = vsub.f32 1.0, %v254_v28 }
  0x77   : > { %v259_v35 = vmax.f32 %v255_v32, 1e-08  ;;  %500 = vlog2.f32 %v256_v29  ;;  %v271_v37 = vsub.f32 1.0, %v255_v32  ;;  %v272_v39 = vmul.f32 %v268_v31, %v268_v31  ;;  %p573_p9 = por %p572_p7, %p571_p4 }
  0x78   : > { %502 = vlog2.f32 %v257_v30  ;;  %v273_v40 = vmul.f32 %v269_v34, %v269_v34  ;;  %v274_v41 = vmul.f32 %v270_v36, %v270_v36  ;;  %v291_v43 = vadd.s32 8, %v290_v38 }
  0x79   : > { %504 = vlog2.f32 %v258_v33  ;;  %v275_v42 = vmul.f32 %v271_v37, %v271_v37  ;;  %v276_v45 = vmul.f32 %v272_v39, %v272_v39  ;;  %v292_v46 = vadd.s32 16, %v290_v38  ;;  %p574_p10 = pnand %p573_p9, %p567_p3 }
  0x7a   : > { %506 = vlog2.f32 %v259_v35  ;;  %v277_v47 = vmul.f32 %v273_v40, %v273_v40  ;;  %v293_v48 = vadd.s32 24, %v290_v38  ;;  %v278_v49 = vmul.f32 %v274_v41, %v274_v41 }
  0x7b   : > { %v295_v50 = vadd.s32 %v294_v44, %v290_v38  ;;  %v279_v51 = vmul.f32 %v275_v42, %v275_v42  ;;  %v296_v52 = vadd.s32 %v294_v44, %v291_v43  ;;  %v280_v54 = vsel %vm824_vm0, %v268_v31, %v276_v45 }
  0x7c   : > { %v297_v55 = vadd.s32 %v294_v44, %v292_v46  ;;  %v281_v58 = vsel %vm828_vm1, %v269_v34, %v277_v47  ;;  %v298_v59 = vadd.s32 %v294_v44, %v293_v48  ;;  %v282_v62 = vsel %vm832_vm2, %v270_v36, %v278_v49 }
  0x7d   : > { %vm299_vm4 = vcmp.lt.s32.totalorder %v295_v50, 48  ;;  %v283_v1 = vsel %vm836_vm3, %v271_v37, %v279_v51  ;;  %vm300_vm5 = vcmp.lt.s32.totalorder %v296_v52, 48 }
  0x7e   : > { %vm301_vm6 = vcmp.lt.s32.totalorder %v297_v55, 48  ;;  %vm302_vm7 = vcmp.lt.s32.totalorder %v298_v59, 48 }
  0x81   : > { %v501_v53 = vpop.eup %500 }
  0x82   : > { %v503_v56 = vpop.eup %502  ;;  %v261_v57 = vmul.f32 0.6931472, %v501_v53 }
  0x83   : > { %v505_v60 = vpop.eup %504  ;;  %v263_v61 = vmul.f32 0.6931472, %v503_v56 }
  0x84   : > { %v507_v63 = vpop.eup %506  ;;  %v265_v0 = vmul.f32 0.6931472, %v505_v60  ;;  %v284_v2 = vmul.f32 %v280_v54, %v261_v57 }
  0x85   : > { %v267_v3 = vmul.f32 0.6931472, %v507_v63  ;;  %v285_v4 = vmul.f32 %v281_v58, %v263_v61 }
  0x86   : > { %v286_v5 = vmul.f32 %v282_v62, %v265_v0  ;;  %v303_v6 = vsel %vm299_vm4, %v284_v2, 0.0 }
  0x87   : > { %v287_v7 = vmul.f32 %v283_v1, %v267_v3  ;;  %v304_v8 = vsel %vm300_vm5, %v285_v4, 0.0 }
  0x88   : > { %v305_v9 = vsel %vm301_vm6, %v286_v5, 0.0  ;;  %v307_v10 = vadd.f32 %v304_v8, %v303_v6 }
  0x89   : > { %v306_v11 = vsel %vm302_vm7, %v287_v7, 0.0 }
  0x8a   : > { %v308_v12 = vadd.f32 %v306_v11, %v305_v9 }
  0x8c   : > { %v309_v13 = vadd.f32 %v308_v12, %v307_v10 }
  0x8e   : > { %310 = vst [vmem:[%s213_s25] sm:$0xff] %v309_v13 }
  0x8f   : > { %577 = shalt.err (!%p574_p10)
}
  0x90   : > { %s578_s19 = scalar_lea.hbm %s865_s8, 128  ;;  %s582_s26 = scalar_lea.hbm %s909_s2, 256 }
  0x91   : > { %p579_p11 = scmp.ne.s32.totalorder %s865_s8, %s578_s19  ;;  %p583_p13 = scmp.lt.u32.totalorder %s865_s8, %s909_s2 }
  0x92   : > { %p584_p12 = scmp.lt.u32.totalorder %s582_s26, %s578_s19  ;;  %p586_p6 = scmp.lt.u32.totalorder %s578_s19, %s865_s8 }
  0x93   : > { %p580_p2 = pnand %p579_p11, %p924_p5 }
  0x94   : > { %p585_p0 = por %p584_p12, %p583_p13 }
  0x95   : > { %p581_p8 = pneg %p580_p2 }
  0x96   : > { %p587_p1 = por %p586_p6, %p585_p0 }
  0x98   : > { %p588_p3 = pnand %p587_p1, %p581_p8 }
  0x9a   : > { %591 = shalt.err (!%p588_p3)
}
  0x9b   : > { %457 = dma.vmem_to_hbm [thread:$0]  (%p924_p5), %s860_s30, 128, %s865_s8, %s312_s14  }
  0x9c PF: > { %s337_s24 = sand.u32 1, %s622_s9   ;;  %p925_p4 = scmp.ne.s32.totalorder %s915_s22, 0 }
  0x9d   : > { %p926_p7 = scmp.ge.s32.totalorder %s634_s12, 2  ;;  %s338_s7 = scalar_lea.sflag [#allocation4], %s337_s24 }
  0x9f   : > { %p460_p9 = pnand %p926_p7, %p925_p4 }
  0xa1   : > { %617 = dma.done.wait (!%p460_p9), %s338_s7, 128  }
  0xa2   : > { %619 = vsyncadd (!%p460_p9), %s338_s7, 4294967168  ;;  %p18_p10 = scmp.ge.s32.totalorder %s683_s15, 4   ;;  %s927_s9 = smov %s626_s10 }
  0xa3   : > { %s928_s10 = smov %s630_s11  ;;  %s929_s11 = smov %s695_s18 }
  0xa4   : > { %s930_s12 = smov %s683_s15  ;;  %20 = sbr.rel (!%p18_p10) target bundleno = 7 (0x7), region = 86 }
  0xab   :  { %343 = vsyncpa [#allocation3], 1 }
  0xac   :  { %345 = vsyncpa [#allocation3 + $0x1], 1 }
  0xad   :  { %346 = vsyncpa [#allocation6], 1 }
  0xae   :  { %348 = vsyncpa [#allocation6 + $0x1], 1 }
  0xaf   :  { %349 = vsyncpa [#allocation4], 1 }
  0xb0   :  { %351 = vsyncpa [#allocation4 + $0x1], 1 }

</bundles_post_ra>
